<compile_context>
chip_gen: v7x
topology: tpu7x:2x2x1
jax: 0.10.0
libtpu: 0.0.40
codegen_flags: <defaults>
</compile_context>

<pallas_src>
import jax
import jax.numpy as jnp
from jax.experimental import pallas as pl
from jax.experimental.pallas import tpu as pltpu

_LANE = 128  # keep every matmul dim lane-dense (multiple of 128)


# ------------------------------ helpers ------------------------------------ #

def _round_up(x, m):
    return (x + m - 1) // m * m


def _vmem_budget_bytes():
    """~75% of physical per-core VMEM (64 MiB v7x, 128 MiB v5e/v6e)."""
    try:
        cap = pltpu.get_tpu_info().vmem_capacity_bytes
    except Exception:  # query unavailable -> assume the smallest generation
        cap = 64 * 2 ** 20
    return int(0.75 * cap)


def conv_layer_as_dense(w_hwio, H, W):
    """Lower Conv2d(kernel=3, stride=2, pad=1) to a dense matrix.

    Returns M of shape (Cin*H*W, Cout*Ho*Wo) such that, for a frame flattened
    channel-major (NCHW order), `flat_in @ M` equals the channel-major
    flattened conv output.  Each entry of M is exactly one weight value or 0.
    """
    KH, KW, Cin, Cout = w_hwio.shape
    Ho = (H + 2 - KH) // 2 + 1   # = ceil(H/2) for k=3, s=2, p=1
    Wo = (W + 2 - KW) // 2 + 1
    # Rh[k, i, h] = 1 iff h == 2*i - 1 + k (zero padding handled implicitly:
    # out-of-range targets simply match no h).
    Rh = (jnp.arange(H)[None, None, :]
          == (2 * jnp.arange(Ho)[None, :, None] - 1
              + jnp.arange(KH)[:, None, None])).astype(jnp.float32)
    Rw = (jnp.arange(W)[None, None, :]
          == (2 * jnp.arange(Wo)[None, :, None] - 1
              + jnp.arange(KW)[:, None, None])).astype(jnp.float32)
    M = jnp.einsum('kih,lxw,klco->chwoix', Rh, Rw, w_hwio,
                   precision=jax.lax.Precision.HIGHEST)
    return M.reshape(Cin * H * W, Cout * Ho * Wo), (Ho, Wo, Cout)


def prepare_encoder(params, h, w, compute_dtype=jnp.float32):
    """Lower every conv layer to a lane-padded dense matrix + bias row.

    Run ONCE per parameter set (hoisted out of the forward hot path).  All K
    and N dims are zero-padded to multiples of 128; consecutive layers stay
    consistent (layer l+1 K == layer l padded N).  Returns (mats, biases,
    n_out) where n_out is the UNPADDED final feature width.
    """
    mats, biases = [], []
    H, W = h, w
    cin = params[0][0].shape[2]
    k_pad = _round_up(cin * H * W, _LANE)
    n_out = None
    for (wt, bb) in params:
        m, (Ho, Wo, Cout) = conv_layer_as_dense(wt, H, W)
        K, N = m.shape
        n_pad = _round_up(N, _LANE)
        m_p = jnp.zeros((k_pad, n_pad), jnp.float32).at[:K, :N].set(m)
        b_full = jnp.broadcast_to(bb[:, None], (Cout, Ho * Wo)).reshape(1, N)
        b_p = jnp.zeros((1, n_pad), jnp.float32).at[:, :N].set(b_full)
        mats.append(m_p.astype(compute_dtype))   # MXU operand dtype
        biases.append(b_p)                        # bias/epilogue stays f32
        k_pad = n_pad
        H, W = Ho, Wo
        n_out = N
    return mats, biases, n_out


# ----------------------------- Pallas kernel -------------------------------- #

def _make_encoder_kernel(num_layers):
    def kernel(x_ref, *refs):
        # refs = (M1, b1, M2, b2, ..., ML, bL, o_ref)
        o_ref = refs[-1]
        a = x_ref[...]                                    # (TB, K0_pad) f32
        for layer in range(num_layers):
            m = refs[2 * layer][...]                      # (K_pad, N_pad)
            b = refs[2 * layer + 1][...]                  # (1, N_pad) f32
            a = jnp.dot(a.astype(m.dtype), m,
                        preferred_element_type=jnp.float32)
            a = jnp.maximum(a + b, 0.0)                   # f32 epilogue (VPU)
        o_ref[...] = a
    return kernel


def _resident_spec(shape, single_buffer):
    imap = lambda i: (0, 0)
    if single_buffer and hasattr(pl, "Buffered"):
        # Constant index_map -> no overlap benefit from double buffering;
        # single-buffer the resident weights to halve their VMEM footprint.
        return pl.BlockSpec(shape, imap, pipeline_mode=pl.Buffered(1))
    return pl.BlockSpec(shape, imap)


def _encoder_call(x_pad, mats, biases, TB, single_buffer_weights):
    BF_pad, F0_pad = x_pad.shape
    num_layers = len(mats)
    n_out_pad = mats[-1].shape[1]
    grid = (BF_pad // TB,)

    in_specs = [pl.BlockSpec((TB, F0_pad), lambda i: (i, 0))]
    operands = [x_pad]
    for m, b in zip(mats, biases):
        in_specs.append(_resident_spec(m.shape, single_buffer_weights))
        in_specs.append(_resident_spec(b.shape, single_buffer_weights))
        operands.append(m)
        operands.append(b)

    weight_bytes = int(sum(m.size * m.dtype.itemsize + 4 * b.size
                           for m, b in zip(mats, biases)))
    flops = int(2 * BF_pad * sum(m.shape[0] * m.shape[1] for m in mats))
    bytes_accessed = int(x_pad.dtype.itemsize * BF_pad * F0_pad
                         + 4 * BF_pad * n_out_pad + weight_bytes)
    wbuf = 1 if single_buffer_weights else 2
    vmem_need = (2 * TB * F0_pad * x_pad.dtype.itemsize     # in tiles (2 bufs)
                 + 2 * TB * n_out_pad * 4                   # out tiles (2 bufs)
                 + wbuf * weight_bytes                       # resident weights
                 + 4 * TB * max(m.shape[1] for m in mats))   # live intermediate
    vmem_limit = int(min(_vmem_budget_bytes(),
                         max(32 * 2 ** 20, 2 * vmem_need)))

    return pl.pallas_call(
        _make_encoder_kernel(num_layers),
        out_shape=jax.ShapeDtypeStruct((BF_pad, n_out_pad), jnp.float32),
        grid_spec=pltpu.PrefetchScalarGridSpec(
            num_scalar_prefetch=0,
            grid=grid,
            in_specs=in_specs,
            out_specs=pl.BlockSpec((TB, n_out_pad), lambda i: (i, 0)),
        ),
        compiler_params=pltpu.CompilerParams(
            dimension_semantics=("parallel",),
            vmem_limit_bytes=vmem_limit,
        ),
        cost_estimate=pl.CostEstimate(
            flops=flops, transcendentals=0, bytes_accessed=bytes_accessed),
    )(*operands)


def encoder_pallas(x_flat, mats, biases, n_out, *, tile_rows=512):
    """x_flat: (B*F, Cin*H*W) f32.  Returns (B*F, n_out) f32."""
    BF, F0 = x_flat.shape
    F0_pad = mats[0].shape[0]

    # Row tile: multiple of 8 sublanes; default 512 rows (fills the MXU LHS on
    # v6e/v7x), but never bigger than ~half of BF so the "parallel" grid axis
    # has >=2 steps and can shard across both TensorCores on v7x.
    # TODO(synk): on v5e a 128-256 row tile may be preferable.
    TB = min(_round_up(tile_rows, 8), max(8, _round_up(pl.cdiv(BF, 2), 8)))
    BF_pad = _round_up(BF, TB)

    x_pad = x_flat
    if BF_pad != BF or F0_pad != F0:
        x_pad = jnp.pad(x_flat, ((0, BF_pad - BF), (0, F0_pad - F0)))

    try:
        out = _encoder_call(x_pad, mats, biases, TB, single_buffer_weights=True)
    except Exception:
        # Fallback if this Pallas build rejects pipeline_mode=pl.Buffered(1).
        out = _encoder_call(x_pad, mats, biases, TB, single_buffer_weights=False)
    return out[:BF, :n_out]


# --------------------------- Parameter creation ----------------------------- #

def init_encoder_params(key, in_channels=1, base_channels=4, num_layers=3):
    """Deterministic init mimicking PyTorch Conv2d default U(-1/sqrt(fan_in), .)."""
    params = []
    cin = in_channels
    for i in range(num_layers):
        cout = base_channels * (2 ** i)
        key, kw, kb = jax.random.split(key, 3)
        fan_in = cin * 3 * 3
        bound = 1.0 / float(jnp.sqrt(jnp.float32(fan_in)))
        w = jax.random.uniform(kw, (3, 3, cin, cout), jnp.float32, -bound, bound)
        b = jax.random.uniform(kb, (cout,), jnp.float32, -bound, bound)
        params.append((w, b))
        cin = cout
    return params, cin


# ------------------------------ Forward pass -------------------------------- #

def ae_video_forward(x, mats, biases, n_out, out_channels, is2d=False,
                     tile_rows=512):
    """x: (batch, chan, frames, h, w) float32 (same as the PyTorch input).

    mats/biases come from prepare_encoder() (weight lowering hoisted out of
    the per-call hot path).
    """
    batch, chan, frames, h, w = x.shape
    # x.transpose(1, 2).contiguous().view(batch*frames, chan, h, w), flattened
    # per frame in NCHW order (matches the final .view() semantics).
    x_flat = jnp.transpose(x, (0, 2, 1, 3, 4)).reshape(batch * frames,
                                                       chan * h * w)
    z = encoder_pallas(x_flat, mats, biases, n_out, tile_rows=tile_rows)
    # z: (batch*frames, out_channels*H'*W') already in NCHW flatten order.
    if is2d:
        z = z.reshape(batch, frames, out_channels, -1)
        z = jnp.transpose(z, (0, 3, 1, 2))
    else:
        z = z.reshape(batch, frames, -1)
        z = jnp.transpose(z, (0, 2, 1))
    return z


# ------------------------------ Reference ----------------------------------- #

def ae_video_forward_ref(x, params, out_channels, is2d=False):
    batch, chan, frames, h, w = x.shape
    x_bf = jnp.transpose(x, (0, 2, 1, 3, 4)).reshape(batch * frames, chan, h, w)
    y = jnp.transpose(x_bf, (0, 2, 3, 1))  # NHWC
    for (wt, bb) in params:
        y = jax.lax.conv_general_dilated(
            y, wt, window_strides=(2, 2), padding=((1, 1), (1, 1)),
            dimension_numbers=('NHWC', 'HWIO', 'NHWC'),
            precision=jax.lax.Precision.HIGHEST)
        y = jnp.maximum(y + bb, 0.0)
    z = jnp.transpose(y, (0, 3, 1, 2))  # NCHW
    if is2d:
        z = z.reshape(batch, frames, out_channels, -1)
        z = jnp.transpose(z, (0, 3, 1, 2))
    else:
        z = z.reshape(batch, frames, -1)
        z = jnp.transpose(z, (0, 2, 1))
    return z


# --------------------------------- Main -------------------------------------- #

if __name__ == "__main__":
    key = jax.random.PRNGKey(0)
    kparams, kx = jax.random.split(key)

    in_channels, base_channels, num_layers = 1, 4, 3
    params, out_channels = init_encoder_params(
        kparams, in_channels, base_channels, num_layers)

    # Small video input: (batch, chan, frames, h, w)
    batch, frames, h, w = 2, 4, 16, 16
    x = jax.random.normal(kx, (batch, in_channels, frames, h, w), jnp.float32)

    # Weight lowering hoisted out of the hot path: done once per parameter set.
    mats_f32, biases_f32, n_out = prepare_encoder(params, h, w,
                                                  compute_dtype=jnp.float32)

    z = jax.block_until_ready(
        ae_video_forward(x, mats_f32, biases_f32, n_out, out_channels,
                         is2d=False))
    z_ref = jax.block_until_ready(
        ae_video_forward_ref(x, params, out_channels, is2d=False))
    assert z.shape == (batch, out_channels * (h // 8) * (w // 8), frames), z.shape
    assert jnp.allclose(z, z_ref, atol=2e-4, rtol=2e-4), \
        float(jnp.max(jnp.abs(z - z_ref)))

    # Exercise the is2d=True branch as well.
    z2 = jax.block_until_ready(
        ae_video_forward(x, mats_f32, biases_f32, n_out, out_channels,
                         is2d=True))
    z2_ref = ae_video_forward_ref(x, params, out_channels, is2d=True)
    assert jnp.allclose(z2, z2_ref, atol=2e-4, rtol=2e-4)

    # bf16 MXU path (weights in bf16, LHS cast in-kernel, f32 epilogue).
    mats_bf16, biases_bf16, _ = prepare_encoder(params, h, w,
                                                compute_dtype=jnp.bfloat16)
    z3 = jax.block_until_ready(
        ae_video_forward(x, mats_bf16, biases_bf16, n_out, out_channels,
                         is2d=False))
    assert jnp.allclose(z3, z_ref, atol=5e-2, rtol=5e-2), \
        float(jnp.max(jnp.abs(z3 - z_ref)))

    # TODO(synk): get_MACs() (thop profiling/printing) and init_from()
    # (torch.load of a checkpoint) are I/O / introspection, not compute.
    print("KERNEL_OK")
</pallas_src>

<mosaic_0001>
module attributes {stable_mosaic.version = 11 : i64} {
  func.func @kernel(%arg0: i32, %arg1: memref<8x256xf32, #tpu.memory_space<vmem>>, %arg2: memref<256x256xf32, #tpu.memory_space<vmem>>, %arg3: memref<1x256xf32, #tpu.memory_space<vmem>>, %arg4: memref<256x128xf32, #tpu.memory_space<vmem>>, %arg5: memref<1x128xf32, #tpu.memory_space<vmem>>, %arg6: memref<128x128xf32, #tpu.memory_space<vmem>>, %arg7: memref<1x128xf32, #tpu.memory_space<vmem>>, %arg8: memref<8x128xf32, #tpu.memory_space<vmem>>) attributes {dimension_semantics = [#tpu.dimension_semantics<parallel>], iteration_bounds = array<i64: 1>, scalar_prefetch = 0 : i64, scratch_operands = 0 : i64, tpu.core_type = #tpu.core_type<tc>, window_params = [{transform_indices = @transform_0, window_bounds = array<i64: 8, 256>}, {pipeline_mode = #tpu.pipeline_mode<synchronous>, transform_indices = @transform_1, window_bounds = array<i64: 256, 256>}, {pipeline_mode = #tpu.pipeline_mode<synchronous>, transform_indices = @transform_2, window_bounds = array<i64: 1, 256>}, {pipeline_mode = #tpu.pipeline_mode<synchronous>, transform_indices = @transform_3, window_bounds = array<i64: 256, 128>}, {pipeline_mode = #tpu.pipeline_mode<synchronous>, transform_indices = @transform_4, window_bounds = array<i64: 1, 128>}, {pipeline_mode = #tpu.pipeline_mode<synchronous>, transform_indices = @transform_5, window_bounds = array<i64: 128, 128>}, {pipeline_mode = #tpu.pipeline_mode<synchronous>, transform_indices = @transform_6, window_bounds = array<i64: 1, 128>}, {transform_indices = @transform_7, window_bounds = array<i64: 8, 128>}]} {
    %c0 = arith.constant 0 : index
    %c0_0 = arith.constant 0 : index
    %0 = vector.load %arg1[%c0, %c0_0] : memref<8x256xf32, #tpu.memory_space<vmem>>, vector<8x256xf32>
    %c0_1 = arith.constant 0 : index
    %c0_2 = arith.constant 0 : index
    %1 = vector.load %arg2[%c0_1, %c0_2] : memref<256x256xf32, #tpu.memory_space<vmem>>, vector<256x256xf32>
    %c0_3 = arith.constant 0 : index
    %c0_4 = arith.constant 0 : index
    %2 = vector.load %arg3[%c0_3, %c0_4] : memref<1x256xf32, #tpu.memory_space<vmem>>, vector<1x256xf32>
    %cst = arith.constant dense<0.000000e+00> : vector<8x256xf32>
    %3 = tpu.matmul %0, %1, %cst {dimension_numbers = #tpu.dot_dimension_numbers<[1], [0], [0], [1], [0, 0, 1, 1], [], []>} : vector<8x256xf32>, vector<256x256xf32>, vector<8x256xf32> -> vector<8x256xf32>
    %4 = vector.broadcast %2 : vector<1x256xf32> to vector<8x256xf32>
    %5 = arith.addf %3, %4 : vector<8x256xf32>
    %cst_5 = arith.constant 0.000000e+00 : f32
    %6 = vector.broadcast %cst_5 : f32 to vector<8x256xf32>
    %7 = arith.maximumf %5, %6 : vector<8x256xf32>
    %c0_6 = arith.constant 0 : index
    %c0_7 = arith.constant 0 : index
    %8 = vector.load %arg4[%c0_6, %c0_7] : memref<256x128xf32, #tpu.memory_space<vmem>>, vector<256x128xf32>
    %c0_8 = arith.constant 0 : index
    %c0_9 = arith.constant 0 : index
    %9 = vector.load %arg5[%c0_8, %c0_9] : memref<1x128xf32, #tpu.memory_space<vmem>>, vector<1x128xf32>
    %cst_10 = arith.constant dense<0.000000e+00> : vector<8x128xf32>
    %10 = tpu.matmul %7, %8, %cst_10 {dimension_numbers = #tpu.dot_dimension_numbers<[1], [0], [0], [1], [0, 0, 1, 1], [], []>} : vector<8x256xf32>, vector<256x128xf32>, vector<8x128xf32> -> vector<8x128xf32>
    %11 = vector.broadcast %9 : vector<1x128xf32> to vector<8x128xf32>
    %12 = arith.addf %10, %11 : vector<8x128xf32>
    %cst_11 = arith.constant 0.000000e+00 : f32
    %13 = vector.broadcast %cst_11 : f32 to vector<8x128xf32>
    %14 = arith.maximumf %12, %13 : vector<8x128xf32>
    %c0_12 = arith.constant 0 : index
    %c0_13 = arith.constant 0 : index
    %15 = vector.load %arg6[%c0_12, %c0_13] : memref<128x128xf32, #tpu.memory_space<vmem>>, vector<128x128xf32>
    %c0_14 = arith.constant 0 : index
    %c0_15 = arith.constant 0 : index
    %16 = vector.load %arg7[%c0_14, %c0_15] : memref<1x128xf32, #tpu.memory_space<vmem>>, vector<1x128xf32>
    %cst_16 = arith.constant dense<0.000000e+00> : vector<8x128xf32>
    %17 = tpu.matmul %14, %15, %cst_16 {dimension_numbers = #tpu.dot_dimension_numbers<[1], [0], [0], [1], [0, 0, 1, 1], [], []>} : vector<8x128xf32>, vector<128x128xf32>, vector<8x128xf32> -> vector<8x128xf32>
    %18 = vector.broadcast %16 : vector<1x128xf32> to vector<8x128xf32>
    %19 = arith.addf %17, %18 : vector<8x128xf32>
    %cst_17 = arith.constant 0.000000e+00 : f32
    %20 = vector.broadcast %cst_17 : f32 to vector<8x128xf32>
    %21 = arith.maximumf %19, %20 : vector<8x128xf32>
    %c0_18 = arith.constant 0 : index
    %c0_19 = arith.constant 0 : index
    %22 = vector.load %arg8[%c0_18, %c0_19] : memref<8x128xf32, #tpu.memory_space<vmem>>, vector<8x128xf32>
    tpu.vector_store %arg8[%c0_18, %c0_19], %21 {strides = array<i32>} : memref<8x128xf32, #tpu.memory_space<vmem>>, vector<8x128xf32>,
    return
  }
  func.func @transform_0(%arg0: i32) -> (i32, i32) {
    %c0_i32 = arith.constant 0 : i32
    %c0_i32_0 = arith.constant 0 : i32
    return %arg0, %c0_i32 : i32, i32
  }
  func.func @transform_1(%arg0: i32) -> (i32, i32) {
    %c0_i32 = arith.constant 0 : i32
    %c0_i32_0 = arith.constant 0 : i32
    %c0_i32_1 = arith.constant 0 : i32
    return %c0_i32, %c0_i32_0 : i32, i32
  }
  func.func @transform_2(%arg0: i32) -> (i32, i32) {
    %c0_i32 = arith.constant 0 : i32
    %c0_i32_0 = arith.constant 0 : i32
    %c0_i32_1 = arith.constant 0 : i32
    return %c0_i32, %c0_i32_0 : i32, i32
  }
  func.func @transform_3(%arg0: i32) -> (i32, i32) {
    %c0_i32 = arith.constant 0 : i32
    %c0_i32_0 = arith.constant 0 : i32
    %c0_i32_1 = arith.constant 0 : i32
    return %c0_i32, %c0_i32_0 : i32, i32
  }
  func.func @transform_4(%arg0: i32) -> (i32, i32) {
    %c0_i32 = arith.constant 0 : i32
    %c0_i32_0 = arith.constant 0 : i32
    %c0_i32_1 = arith.constant 0 : i32
    return %c0_i32, %c0_i32_0 : i32, i32
  }
  func.func @transform_5(%arg0: i32) -> (i32, i32) {
    %c0_i32 = arith.constant 0 : i32
    %c0_i32_0 = arith.constant 0 : i32
    %c0_i32_1 = arith.constant 0 : i32
    return %c0_i32, %c0_i32_0 : i32, i32
  }
  func.func @transform_6(%arg0: i32) -> (i32, i32) {
    %c0_i32 = arith.constant 0 : i32
    %c0_i32_0 = arith.constant 0 : i32
    %c0_i32_1 = arith.constant 0 : i32
    return %c0_i32, %c0_i32_0 : i32, i32
  }
  func.func @transform_7(%arg0: i32) -> (i32, i32) {
    %c0_i32 = arith.constant 0 : i32
    %c0_i32_0 = arith.constant 0 : i32
    return %arg0, %c0_i32 : i32, i32
  }
}

module attributes {stable_mosaic.version = 11 : i64} {
  func.func @kernel(%arg0: i32, %arg1: memref<8x256xf32, #tpu.memory_space<vmem>>, %arg2: memref<256x256xf32, #tpu.memory_space<vmem>>, %arg3: memref<1x256xf32, #tpu.memory_space<vmem>>, %arg4: memref<256x128xf32, #tpu.memory_space<vmem>>, %arg5: memref<1x128xf32, #tpu.memory_space<vmem>>, %arg6: memref<128x128xf32, #tpu.memory_space<vmem>>, %arg7: memref<1x128xf32, #tpu.memory_space<vmem>>, %arg8: memref<8x128xf32, #tpu.memory_space<vmem>>) attributes {dimension_semantics = [#tpu.dimension_semantics<parallel>], iteration_bounds = array<i64: 1>, scalar_prefetch = 0 : i64, scratch_operands = 0 : i64, tpu.core_type = #tpu.core_type<tc>, window_params = [{transform_indices = @transform_0, window_bounds = array<i64: 8, 256>}, {pipeline_mode = #tpu.pipeline_mode<synchronous>, transform_indices = @transform_1, window_bounds = array<i64: 256, 256>}, {pipeline_mode = #tpu.pipeline_mode<synchronous>, transform_indices = @transform_2, window_bounds = array<i64: 1, 256>}, {pipeline_mode = #tpu.pipeline_mode<synchronous>, transform_indices = @transform_3, window_bounds = array<i64: 256, 128>}, {pipeline_mode = #tpu.pipeline_mode<synchronous>, transform_indices = @transform_4, window_bounds = array<i64: 1, 128>}, {pipeline_mode = #tpu.pipeline_mode<synchronous>, transform_indices = @transform_5, window_bounds = array<i64: 128, 128>}, {pipeline_mode = #tpu.pipeline_mode<synchronous>, transform_indices = @transform_6, window_bounds = array<i64: 1, 128>}, {transform_indices = @transform_7, window_bounds = array<i64: 8, 128>}]} {
    %c0 = arith.constant 0 : index
    %c0_0 = arith.constant 0 : index
    %0 = vector.load %arg1[%c0, %c0_0] : memref<8x256xf32, #tpu.memory_space<vmem>>, vector<8x256xf32>
    %c0_1 = arith.constant 0 : index
    %c0_2 = arith.constant 0 : index
    %1 = vector.load %arg2[%c0_1, %c0_2] : memref<256x256xf32, #tpu.memory_space<vmem>>, vector<256x256xf32>
    %c0_3 = arith.constant 0 : index
    %c0_4 = arith.constant 0 : index
    %2 = vector.load %arg3[%c0_3, %c0_4] : memref<1x256xf32, #tpu.memory_space<vmem>>, vector<1x256xf32>
    %cst = arith.constant dense<0.000000e+00> : vector<8x256xf32>
    %3 = tpu.matmul %0, %1, %cst {dimension_numbers = #tpu.dot_dimension_numbers<[1], [0], [0], [1], [0, 0, 1, 1], [], []>} : vector<8x256xf32>, vector<256x256xf32>, vector<8x256xf32> -> vector<8x256xf32>
    %4 = vector.broadcast %2 : vector<1x256xf32> to vector<8x256xf32>
    %5 = arith.addf %3, %4 : vector<8x256xf32>
    %cst_5 = arith.constant 0.000000e+00 : f32
    %6 = vector.broadcast %cst_5 : f32 to vector<8x256xf32>
    %7 = arith.maximumf %5, %6 : vector<8x256xf32>
    %c0_6 = arith.constant 0 : index
    %c0_7 = arith.constant 0 : index
    %8 = vector.load %arg4[%c0_6, %c0_7] : memref<256x128xf32, #tpu.memory_space<vmem>>, vector<256x128xf32>
    %c0_8 = arith.constant 0 : index
    %c0_9 = arith.constant 0 : index
    %9 = vector.load %arg5[%c0_8, %c0_9] : memref<1x128xf32, #tpu.memory_space<vmem>>, vector<1x128xf32>
    %cst_10 = arith.constant dense<0.000000e+00> : vector<8x128xf32>
    %10 = tpu.matmul %7, %8, %cst_10 {dimension_numbers = #tpu.dot_dimension_numbers<[1], [0], [0], [1], [0, 0, 1, 1], [], []>} : vector<8x256xf32>, vector<256x128xf32>, vector<8x128xf32> -> vector<8x128xf32>
    %11 = vector.broadcast %9 : vector<1x128xf32> to vector<8x128xf32>
    %12 = arith.addf %10, %11 : vector<8x128xf32>
    %cst_11 = arith.constant 0.000000e+00 : f32
    %13 = vector.broadcast %cst_11 : f32 to vector<8x128xf32>
    %14 = arith.maximumf %12, %13 : vector<8x128xf32>
    %c0_12 = arith.constant 0 : index
    %c0_13 = arith.constant 0 : index
    %15 = vector.load %arg6[%c0_12, %c0_13] : memref<128x128xf32, #tpu.memory_space<vmem>>, vector<128x128xf32>
    %c0_14 = arith.constant 0 : index
    %c0_15 = arith.constant 0 : index
    %16 = vector.load %arg7[%c0_14, %c0_15] : memref<1x128xf32, #tpu.memory_space<vmem>>, vector<1x128xf32>
    %cst_16 = arith.constant dense<0.000000e+00> : vector<8x128xf32>
    %17 = tpu.matmul %14, %15, %cst_16 {dimension_numbers = #tpu.dot_dimension_numbers<[1], [0], [0], [1], [0, 0, 1, 1], [], []>} : vector<8x128xf32>, vector<128x128xf32>, vector<8x128xf32> -> vector<8x128xf32>
    %18 = vector.broadcast %16 : vector<1x128xf32> to vector<8x128xf32>
    %19 = arith.addf %17, %18 : vector<8x128xf32>
    %cst_17 = arith.constant 0.000000e+00 : f32
    %20 = vector.broadcast %cst_17 : f32 to vector<8x128xf32>
    %21 = arith.maximumf %19, %20 : vector<8x128xf32>
    %c0_18 = arith.constant 0 : index
    %c0_19 = arith.constant 0 : index
    %22 = vector.load %arg8[%c0_18, %c0_19] : memref<8x128xf32, #tpu.memory_space<vmem>>, vector<8x128xf32>
    tpu.vector_store %arg8[%c0_18, %c0_19], %21 {strides = array<i32>} : memref<8x128xf32, #tpu.memory_space<vmem>>, vector<8x128xf32>,
    return
  }
  func.func @transform_0(%arg0: i32) -> (i32, i32) {
    %c0_i32 = arith.constant 0 : i32
    %c0_i32_0 = arith.constant 0 : i32
    return %arg0, %c0_i32 : i32, i32
  }
  func.func @transform_1(%arg0: i32) -> (i32, i32) {
    %c0_i32 = arith.constant 0 : i32
    %c0_i32_0 = arith.constant 0 : i32
    %c0_i32_1 = arith.constant 0 : i32
    return %c0_i32, %c0_i32_0 : i32, i32
  }
  func.func @transform_2(%arg0: i32) -> (i32, i32) {
    %c0_i32 = arith.constant 0 : i32
    %c0_i32_0 = arith.constant 0 : i32
    %c0_i32_1 = arith.constant 0 : i32
    return %c0_i32, %c0_i32_0 : i32, i32
  }
  func.func @transform_3(%arg0: i32) -> (i32, i32) {
    %c0_i32 = arith.constant 0 : i32
    %c0_i32_0 = arith.constant 0 : i32
    %c0_i32_1 = arith.constant 0 : i32
    return %c0_i32, %c0_i32_0 : i32, i32
  }
  func.func @transform_4(%arg0: i32) -> (i32, i32) {
    %c0_i32 = arith.constant 0 : i32
    %c0_i32_0 = arith.constant 0 : i32
    %c0_i32_1 = arith.constant 0 : i32
    return %c0_i32, %c0_i32_0 : i32, i32
  }
  func.func @transform_5(%arg0: i32) -> (i32, i32) {
    %c0_i32 = arith.constant 0 : i32
    %c0_i32_0 = arith.constant 0 : i32
    %c0_i32_1 = arith.constant 0 : i32
    return %c0_i32, %c0_i32_0 : i32, i32
  }
  func.func @transform_6(%arg0: i32) -> (i32, i32) {
    %c0_i32 = arith.constant 0 : i32
    %c0_i32_0 = arith.constant 0 : i32
    %c0_i32_1 = arith.constant 0 : i32
    return %c0_i32, %c0_i32_0 : i32, i32
  }
  func.func @transform_7(%arg0: i32) -> (i32, i32) {
    %c0_i32 = arith.constant 0 : i32
    %c0_i32_0 = arith.constant 0 : i32
    return %arg0, %c0_i32 : i32, i32
  }
}

</mosaic_0001>

<bundles_post_ra>
// kernel: tpu_custom_call.1
= control target key start
LH: loop header
LB: loop body
LE: loop exit
PB: predicated region body
PF: predicated region fallthrough
CT: control target
= control target key end

     0   :  { %12 = vsyncpa [#allocation3], 0  ;;  %s913_s0 = inlined_call_operand.hbm [shape: f32[8,256], index: 0, kind: input, shape index: {}]   ;;  %s914_s1 = inlined_call_operand.hbm [shape: f32[256,256], index: 1, kind: input, shape index: {}]   ;;  %s915_s2 = inlined_call_operand.vmem [shape: f32[1,256], index: 2, kind: input, shape index: {}]   ;;  %s916_s3 = inlined_call_operand.hbm [shape: f32[256,128], index: 3, kind: input, shape index: {}]   ;;  %s917_s4 = inlined_call_operand.vmem [shape: f32[1,128], index: 4, kind: input, shape index: {}]   ;;  %s918_s5 = inlined_call_operand.hbm [shape: f32[128,128], index: 5, kind: input, shape index: {}]   ;;  %s919_s6 = inlined_call_operand.vmem [shape: f32[1,128], index: 6, kind: input, shape index: {}]   ;;  %s920_s7 = inlined_call_operand.hbm [shape: f32[8,128], index: 7, kind: output, shape index: {}]  }
   0x1   :  { %13 = vsyncpa [#allocation6], 0 }
   0x2   :  { %14 = vsyncpa [#allocation9], 0 }
   0x3   :  { %15 = vsyncpa [#allocation4], 0  ;;  %s792_s24 = smov [#allocation5]   ;;  %s674_s28 = scalar_lea.hbm %s914_s1, 8192 }
   0x4   :  { %s31_s25 = sshll.u32 %s792_s24, 4  ;;  %p675_p0 = scmp.ne.s32.totalorder %s914_s1, %s674_s28  ;;  %s32_s25 = int_to_ptr.vmem [resolvable:$true] %s31_s25 }
   0x5   :  { %p678_p1 = scmp.lt.u32.totalorder %s674_s28, %s914_s1 }
   0x7   :  { %p680_p2 = pnand %p678_p1, %p675_p0 }
   0x9   :  { %683 = shalt.err (!%p680_p2)
}
   0xa   :  { %s684_s10 = scalar_lea.vmem %s32_s25, 8192  ;;  %p689_p4 = scmp.lt.s32.totalorder %s32_s25, %s32_s25 }
   0xb   :  { %p685_p3 = scmp.ne.s32.totalorder %s32_s25, %s684_s10  ;;  %p690_p5 = scmp.lt.s32.totalorder %s684_s10, %s684_s10 }
   0xd   :  { %p691_p6 = por %p690_p5, %p689_p4 }
   0xf   :  { %p692_p7 = pnand %p691_p6, %p685_p3 }
  0x11   :  { %695 = shalt.err (!%p692_p7)
}
  0x12   :  { %s793_s11 = smov 256   ;;  %s794_s12 = smov 16  }
  0x13   :  { %37 = dma.hbm_to_vmem [thread:$0]  %s914_s1, 8192, %s32_s25, [#allocation6], %s793_s11, %s793_s11, %s794_s12  }
  0x14   :  { %s795_s15 = smov [#allocation2]   ;;  %s796_s17 = smov [#allocation7]  }
  0x15   :  { %s22_s16 = sshll.u32 %s795_s15, 4  ;;  %s45_s18 = sshll.u32 %s796_s17, 4  ;;  %s23_s16 = int_to_ptr.vmem [resolvable:$true] %s22_s16  ;;  %s46_s18 = int_to_ptr.vmem [resolvable:$true] %s45_s18 }
  0x16   :  { %s696_s21 = scalar_lea.hbm %s913_s0, 256 }
  0x17   :  { %p697_p8 = scmp.ne.s32.totalorder %s913_s0, %s696_s21  ;;  %p700_p9 = scmp.lt.u32.totalorder %s696_s21, %s913_s0 }
  0x19   :  { %p702_p10 = pnand %p700_p9, %p697_p8 }
  0x1b   :  { %705 = shalt.err (!%p702_p10)
}
  0x1c   :  { %s706_s1 = scalar_lea.vmem %s23_s16, 256  ;;  %p711_p12 = scmp.lt.s32.totalorder %s23_s16, %s23_s16 }
  0x1d   :  { %p707_p11 = scmp.ne.s32.totalorder %s23_s16, %s706_s1  ;;  %p712_p13 = scmp.lt.s32.totalorder %s706_s1, %s706_s1 }
  0x1f   :  { %p713_p0 = por %p712_p13, %p711_p12 }
  0x21   :  { %p714_p1 = pnand %p713_p0, %p707_p11 }
  0x23   :  { %717 = shalt.err (!%p714_p1)
}
  0x24   :  { %25 = dma.hbm_to_vmem [thread:$0]  %s913_s0, 256, %s23_s16, [#allocation3]  }
  0x25   :  { %s718_s30 = scalar_lea.hbm %s916_s3, 4096 }
  0x26   :  { %p719_p2 = scmp.ne.s32.totalorder %s916_s3, %s718_s30  ;;  %p722_p3 = scmp.lt.u32.totalorder %s718_s30, %s916_s3 }
  0x28   :  { %p724_p4 = pnand %p722_p3, %p719_p2 }
  0x2a   :  { %727 = shalt.err (!%p724_p4)
}
  0x2b   :  { %s728_s12 = scalar_lea.vmem %s46_s18, 4096  ;;  %p733_p6 = scmp.lt.s32.totalorder %s46_s18, %s46_s18 }
  0x2c   :  { %p729_p5 = scmp.ne.s32.totalorder %s46_s18, %s728_s12  ;;  %p734_p7 = scmp.lt.s32.totalorder %s728_s12, %s728_s12 }
  0x2e   :  { %p735_p8 = por %p734_p7, %p733_p6 }
  0x30   :  { %p736_p9 = pnand %p735_p8, %p729_p5 }
  0x32   :  { %739 = shalt.err (!%p736_p9)
}
  0x33   :  { %s797_s0 = smov 128   ;;  %s798_s13 = smov 8  }
  0x34   :  { %51 = dma.hbm_to_vmem [thread:$0]  %s916_s3, 4096, %s46_s18, [#allocation6], %s797_s0, %s797_s0, %s798_s13  }
  0x35   :  { %s799_s16 = smov [#allocation8]   ;;  %s740_s21 = scalar_lea.hbm %s918_s5, 2048 }
  0x36   :  { %s59_s17 = sshll.u32 %s799_s16, 4  ;;  %p741_p10 = scmp.ne.s32.totalorder %s918_s5, %s740_s21  ;;  %s60_s17 = int_to_ptr.vmem [resolvable:$true] %s59_s17 }
  0x37   :  { %p744_p11 = scmp.lt.u32.totalorder %s740_s21, %s918_s5 }
  0x39   :  { %p746_p12 = pnand %p744_p11, %p741_p10 }
  0x3b   :  { %749 = shalt.err (!%p746_p12)
}
  0x3c   :  { %s750_s1 = scalar_lea.vmem %s60_s17, 2048  ;;  %p755_p0 = scmp.lt.s32.totalorder %s60_s17, %s60_s17 }
  0x3d   :  { %p751_p13 = scmp.ne.s32.totalorder %s60_s17, %s750_s1  ;;  %p756_p1 = scmp.lt.s32.totalorder %s750_s1, %s750_s1 }
  0x3f   :  { %p757_p2 = por %p756_p1, %p755_p0 }
  0x41   :  { %p758_p3 = pnand %p757_p2, %p751_p13 }
  0x43   :  { %761 = shalt.err (!%p758_p3)
}
  0x44   :  { %65 = dma.hbm_to_vmem [thread:$0]  %s918_s5, 2048, %s60_s17, [#allocation9], %s797_s0, %s797_s0, %s798_s13  }
  0x45   :  { %784 = dma.done.wait [#allocation3], 256  }
  0x46   :  { %785 = vsyncadd [#allocation3], 4294967040 }
  0x47   :  { %786 = dma.done.wait [#allocation6], 12288  }
  0x48   :  { %787 = vsyncadd [#allocation6], 4294955008 }
  0x49   :  { %788 = dma.done.wait [#allocation9], 2048  }
  0x4a   :  { %789 = vsyncadd [#allocation9], 4294965248  ;;  %v83_v0 = vld [vmem:[#allocation5 + $0x8] sm:$0xff]  ;;  %v85_v1 = vld [vmem:[#allocation5 + $0x18] sm:$0xff]  ;;  %vm801_vm0 = vmmov 0   ;;  %s803_s30 = smov [#allocation10]  }
  0x4b   :  { %v82_v2 = vld [vmem:[#allocation5] sm:$0xff]  ;;  %v542_v3 = vpack.c.bf16 %v85_v1, %v83_v0  ;;  %v84_v4 = vld [vmem:[#allocation5 + $0x10] sm:$0xff]  ;;  %v87_v5 = vld [vmem:[#allocation5 + $0x28] sm:$0xff]  ;;  %s442_s8 = sshll.u32 %s803_s30, 4  ;;  %s443_s8 = int_to_ptr.vmem [resolvable:$true] %s442_s8 }
  0x4c   :  { %v89_v6 = vld [vmem:[#allocation5 + $0x38] sm:$0xff]  ;;  %v544_v7 = vpack.c.bf16 %v84_v4, %v82_v2  ;;  %v86_v9 = vld [vmem:[#allocation5 + $0x20] sm:$0xff]  ;;  %v88_v10 = vld [vmem:[#allocation5 + $0x30] sm:$0xff]  ;;  %s762_s9 = scalar_lea.vmem %s443_s8, 128  ;;  %p767_p5 = scmp.lt.s32.totalorder %s443_s8, %s443_s8 }
  0x4d   :  { %v546_v8 = vpack.c.bf16 %v89_v6, %v87_v5  ;;  %v91_v11 = vld [vmem:[#allocation5 + $0x48] sm:$0xff]  ;;  %543 = vmatprep.subr.bf16.mxu0 %v542_v3  ;;  %v93_v12 = vld [vmem:[#allocation5 + $0x58] sm:$0xff]  ;;  %v548_v13 = vpack.c.bf16 %v88_v10, %v86_v9  ;;  %v90_v15 = vld [vmem:[#allocation5 + $0x40] sm:$0xff]  ;;  %p763_p4 = scmp.ne.s32.totalorder %s443_s8, %s762_s9  ;;  %p768_p6 = scmp.lt.s32.totalorder %s762_s9, %s762_s9 }
  0x4e   :  { %545 = vmatpush1.bf16.msra.mxu0 %v544_v7  ;;  %v550_v14 = vpack.c.bf16 %v93_v12, %v91_v11  ;;  %v92_v16 = vld [vmem:[#allocation5 + $0x50] sm:$0xff]  ;;  %v95_v17 = vld [vmem:[#allocation5 + $0x68] sm:$0xff]  ;;  %v97_v18 = vld [vmem:[#allocation5 + $0x78] sm:$0xff] }
  0x4f   :  { %547 = vmatprep.subr.bf16.mxu0 %v546_v8  ;;  %v552_v19 = vpack.c.bf16 %v92_v16, %v90_v15  ;;  %v554_v20 = vpack.c.bf16 %v97_v18, %v95_v17  ;;  %v94_v21 = vld [vmem:[#allocation5 + $0x60] sm:$0xff]  ;;  %v96_v22 = vld [vmem:[#allocation5 + $0x70] sm:$0xff]  ;;  %v99_v23 = vld [vmem:[#allocation5 + $0x88] sm:$0xff]  ;;  %p769_p7 = por %p768_p6, %p767_p5 }
  0x50   :  { %v101_v24 = vld [vmem:[#allocation5 + $0x98] sm:$0xff]  ;;  %v556_v25 = vpack.c.bf16 %v96_v22, %v94_v21  ;;  %v98_v27 = vld [vmem:[#allocation5 + $0x80] sm:$0xff]  ;;  %v100_v28 = vld [vmem:[#allocation5 + $0x90] sm:$0xff] }
  0x51   :  { %v558_v26 = vpack.c.bf16 %v101_v24, %v99_v23  ;;  %v103_v29 = vld [vmem:[#allocation5 + $0xa8] sm:$0xff]  ;;  %v105_v30 = vld [vmem:[#allocation5 + $0xb8] sm:$0xff]  ;;  %v560_v31 = vpack.c.bf16 %v100_v28, %v98_v27  ;;  %v102_v33 = vld [vmem:[#allocation5 + $0xa0] sm:$0xff]  ;;  %p770_p8 = pnand %p769_p7, %p763_p4 }
  0x52   :  { %549 = vmatpush1.bf16.msra.mxu0 %v548_v13  ;;  %v562_v32 = vpack.c.bf16 %v105_v30, %v103_v29  ;;  %v104_v34 = vld [vmem:[#allocation5 + $0xb0] sm:$0xff]  ;;  %v107_v35 = vld [vmem:[#allocation5 + $0xc8] sm:$0xff]  ;;  %v109_v36 = vld [vmem:[#allocation5 + $0xd8] sm:$0xff] }
  0x53   :  { %551 = vmatprep.subr.bf16.mxu0 %v550_v14  ;;  %v564_v37 = vpack.c.bf16 %v104_v34, %v102_v33  ;;  %v106_v38 = vld [vmem:[#allocation5 + $0xc0] sm:$0xff]  ;;  %v108_v39 = vld [vmem:[#allocation5 + $0xd0] sm:$0xff]  ;;  %v566_v40 = vpack.c.bf16 %v109_v36, %v107_v35  ;;  %v111_v41 = vld [vmem:[#allocation5 + $0xe8] sm:$0xff] }
  0x54   :  { %v113_v42 = vld [vmem:[#allocation5 + $0xf8] sm:$0xff]  ;;  %v247_v44 = vld [vmem:[#allocation7 + $0x80] sm:$0xff]  ;;  %v248_v45 = vld [vmem:[#allocation7 + $0x88] sm:$0xff]  ;;  %v568_v51 = vpack.c.bf16 %v108_v39, %v106_v38 }
  0x55   :  { %v81_v43 = vld [vmem:[#allocation2 + $0x8] sm:$0xff]  ;;  %v231_v46 = vld [vmem:[#allocation7] sm:$0xff]  ;;  %v606_v47 = vpack.c.bf16 %v248_v45, %v247_v44  ;;  %v232_v48 = vld [vmem:[#allocation7 + $0x8] sm:$0xff]  ;;  %v570_v57 = vpack.c.bf16 %v113_v42, %v111_v41 }
  0x56   :  { %553 = vmatpush1.bf16.msra.mxu0 %v552_v19  ;;  %222 = vmatprep.mubr.f32.mxu0 %v81_v43  ;;  %v249_v49 = vld [vmem:[#allocation7 + $0x90] sm:$0xff]  ;;  %v250_v50 = vld [vmem:[#allocation7 + $0x98] sm:$0xff]  ;;  %v608_v52 = vpack.c.bf16 %v232_v48, %v231_v46  ;;  %v251_v56 = vld [vmem:[#allocation7 + $0xa0] sm:$0xff] }
  0x57   :  { %555 = vmatprep.subr.bf16.mxu0 %v554_v20  ;;  %v610_v53 = vpack.c.bf16 %v250_v50, %v249_v49  ;;  %v233_v54 = vld [vmem:[#allocation7 + $0x10] sm:$0xff]  ;;  %v234_v55 = vld [vmem:[#allocation7 + $0x18] sm:$0xff]  ;;  %v110_v58 = vld [vmem:[#allocation5 + $0xe0] sm:$0xff]  ;;  %607 = vmatprep.subr.bf16.mxu1 %v606_v47 }
  0x58   :  { %v112_v59 = vld [vmem:[#allocation5 + $0xf0] sm:$0xff]  ;;  %v252_v60 = vld [vmem:[#allocation7 + $0xa8] sm:$0xff]  ;;  %v117_v62 = vld [vmem:[#allocation5 + $0x118] sm:$0xff]  ;;  %609 = vmatpush3.bf16.msra.mxu1 %v608_v52  ;;  %v612_v63 = vpack.c.bf16 %v234_v55, %v233_v54 }
  0x59   :  { %v115_v61 = vld [vmem:[#allocation5 + $0x108] sm:$0xff]  ;;  %611 = vmatprep.subr.bf16.mxu1 %v610_v53  ;;  %v614_v0 = vpack.c.bf16 %v252_v60, %v251_v56  ;;  %v235_v1 = vld [vmem:[#allocation7 + $0x20] sm:$0xff]  ;;  %v572_v3 = vpack.c.bf16 %v112_v59, %v110_v58  ;;  %v253_v4 = vld [vmem:[#allocation7 + $0xb0] sm:$0xff] }
  0x5a   :  { %557 = vmatpush1.bf16.msra.mxu0 %v556_v25  ;;  %v236_v2 = vld [vmem:[#allocation7 + $0x28] sm:$0xff]  ;;  %v254_v5 = vld [vmem:[#allocation7 + $0xb8] sm:$0xff]  ;;  %v574_v6 = vpack.c.bf16 %v117_v62, %v115_v61  ;;  %v114_v7 = vld [vmem:[#allocation5 + $0x100] sm:$0xff] }
  0x5b   :  { %559 = vmatprep.subr.bf16.mxu0 %v558_v26  ;;  %v116_v8 = vld [vmem:[#allocation5 + $0x110] sm:$0xff]  ;;  %v119_v9 = vld [vmem:[#allocation5 + $0x128] sm:$0xff]  ;;  %v121_v10 = vld [vmem:[#allocation5 + $0x138] sm:$0xff]  ;;  %v616_v11 = vpack.c.bf16 %v236_v2, %v235_v1  ;;  %v618_v12 = vpack.c.bf16 %v254_v5, %v253_v4 }
  0x5c   :  { %613 = vmatpush3.bf16.msra.mxu1 %v612_v63  ;;  %v237_v13 = vld [vmem:[#allocation7 + $0x30] sm:$0xff]  ;;  %v238_v14 = vld [vmem:[#allocation7 + $0x38] sm:$0xff]  ;;  %v576_v15 = vpack.c.bf16 %v116_v8, %v114_v7  ;;  %v255_v16 = vld [vmem:[#allocation7 + $0xc0] sm:$0xff]  ;;  %v578_v18 = vpack.c.bf16 %v121_v10, %v119_v9 }
  0x5d   :  { %615 = vmatprep.subr.bf16.mxu1 %v614_v0  ;;  %v256_v17 = vld [vmem:[#allocation7 + $0xc8] sm:$0xff]  ;;  %v118_v19 = vld [vmem:[#allocation5 + $0x120] sm:$0xff]  ;;  %v120_v20 = vld [vmem:[#allocation5 + $0x130] sm:$0xff]  ;;  %v620_v23 = vpack.c.bf16 %v238_v14, %v237_v13 }
  0x5e   :  { %561 = vmatpush1.bf16.msra.mxu0 %v560_v31  ;;  %v123_v21 = vld [vmem:[#allocation5 + $0x148] sm:$0xff]  ;;  %v125_v22 = vld [vmem:[#allocation5 + $0x158] sm:$0xff]  ;;  %v622_v24 = vpack.c.bf16 %v256_v17, %v255_v16  ;;  %v239_v25 = vld [vmem:[#allocation7 + $0x40] sm:$0xff]  ;;  %v580_v27 = vpack.c.bf16 %v120_v20, %v118_v19  ;;  %v148_v19 = vlaneseq }
  0x5f   :  { %563 = vmatprep.subr.bf16.mxu0 %v562_v32  ;;  %v240_v26 = vld [vmem:[#allocation7 + $0x48] sm:$0xff]  ;;  %v257_v28 = vld [vmem:[#allocation7 + $0xd0] sm:$0xff]  ;;  %v258_v29 = vld [vmem:[#allocation7 + $0xd8] sm:$0xff]  ;;  %v582_v30 = vpack.c.bf16 %v125_v22, %v123_v21 }
  0x60   :  { %617 = vmatpush3.bf16.msra.mxu1 %v616_v11  ;;  %v122_v31 = vld [vmem:[#allocation5 + $0x140] sm:$0xff]  ;;  %v124_v32 = vld [vmem:[#allocation5 + $0x150] sm:$0xff]  ;;  %v127_v33 = vld [vmem:[#allocation5 + $0x168] sm:$0xff]  ;;  %v624_v35 = vpack.c.bf16 %v240_v26, %v239_v25  ;;  %v626_v36 = vpack.c.bf16 %v258_v29, %v257_v28  ;;  %v149_v20 = vshrl.u32 %v148_v19, 7 }
  0x61   :  { %619 = vmatprep.subr.bf16.mxu1 %v618_v12  ;;  %v129_v34 = vld [vmem:[#allocation5 + $0x178] sm:$0xff]  ;;  %v584_v39 = vpack.c.bf16 %v124_v32, %v122_v31  ;;  %v260_v41 = vld [vmem:[#allocation7 + $0xe8] sm:$0xff]  ;;  %v126_v43 = vld [vmem:[#allocation5 + $0x160] sm:$0xff] }
  0x62   :  { %565 = vmatpush1.bf16.msra.mxu0 %v564_v37  ;;  %v241_v37 = vld [vmem:[#allocation7 + $0x50] sm:$0xff]  ;;  %v242_v38 = vld [vmem:[#allocation7 + $0x58] sm:$0xff]  ;;  %v586_v42 = vpack.c.bf16 %v129_v34, %v127_v33  ;;  %v131_v45 = vld [vmem:[#allocation5 + $0x188] sm:$0xff]  ;;  %v150_v21 = vsub.s32 0, %v149_v20 }
  0x63   :  { %567 = vmatprep.subr.bf16.mxu0 %v566_v40  ;;  %v259_v40 = vld [vmem:[#allocation7 + $0xe0] sm:$0xff]  ;;  %v128_v44 = vld [vmem:[#allocation5 + $0x170] sm:$0xff]  ;;  %v133_v46 = vld [vmem:[#allocation5 + $0x198] sm:$0xff]  ;;  %v628_v47 = vpack.c.bf16 %v242_v38, %v241_v37 }
  0x64   :  { %621 = vmatpush3.bf16.msra.mxu1 %v620_v23  ;;  %v630_v48 = vpack.c.bf16 %v260_v41, %v259_v40  ;;  %v588_v49 = vpack.c.bf16 %v128_v44, %v126_v43  ;;  %v590_v50 = vpack.c.bf16 %v133_v46, %v131_v45  ;;  %v132_v52 = vld [vmem:[#allocation5 + $0x190] sm:$0xff]  ;;  %v135_v53 = vld [vmem:[#allocation5 + $0x1a8] sm:$0xff]  ;;  %v137_v54 = vld [vmem:[#allocation5 + $0x1b8] sm:$0xff]  ;;  %v154_v23 = vsub.s32 1, %v149_v20 }
  0x65   :  { %623 = vmatprep.subr.bf16.mxu1 %v622_v24  ;;  %v594_v56 = vpack.c.bf16 %v137_v54, %v135_v53  ;;  %v136_v58 = vld [vmem:[#allocation5 + $0x1b0] sm:$0xff]  ;;  %v139_v59 = vld [vmem:[#allocation5 + $0x1c8] sm:$0xff]  ;;  %v141_v60 = vld [vmem:[#allocation5 + $0x1d8] sm:$0xff] }
  0x66   :  { %569 = vmatpush1.bf16.msra.mxu0 %v568_v51  ;;  %v130_v51 = vld [vmem:[#allocation5 + $0x180] sm:$0xff]  ;;  %v598_v62 = vpack.c.bf16 %v141_v60, %v139_v59  ;;  %v140_v0 = vld [vmem:[#allocation5 + $0x1d0] sm:$0xff]  ;;  %v143_v1 = vld [vmem:[#allocation5 + $0x1e8] sm:$0xff] }
  0x67   :  { %571 = vmatprep.subr.bf16.mxu0 %v570_v57  ;;  %v592_v55 = vpack.c.bf16 %v132_v52, %v130_v51  ;;  %v134_v57 = vld [vmem:[#allocation5 + $0x1a0] sm:$0xff]  ;;  %v145_v2 = vld [vmem:[#allocation5 + $0x1f8] sm:$0xff]  ;;  %v80_v8 = vld [vmem:[#allocation2] sm:$0xff] }
  0x68   :  { %625 = vmatpush3.bf16.msra.mxu1 %v624_v35  ;;  %v596_v61 = vpack.c.bf16 %v136_v58, %v134_v57  ;;  %v138_v63 = vld [vmem:[#allocation5 + $0x1c0] sm:$0xff]  ;;  %v602_v4 = vpack.c.bf16 %v145_v2, %v143_v1  ;;  %v244_v10 = vld [vmem:[#allocation7 + $0x68] sm:$0xff]  ;;  %v261_v12 = vld [vmem:[#allocation7 + $0xf0] sm:$0xff] }
  0x69   :  { %627 = vmatprep.subr.bf16.mxu1 %v626_v36  ;;  %v142_v5 = vld [vmem:[#allocation5 + $0x1e0] sm:$0xff]  ;;  %v262_v13 = vld [vmem:[#allocation7 + $0xf8] sm:$0xff]  ;;  %v146_v22 = vld [vmem:[%s915_s2] sm:$0x3] }
  0x6a   :  { %573 = vmatpush1.bf16.msra.mxu0 %v572_v3  ;;  %v600_v3 = vpack.c.bf16 %v140_v0, %v138_v63  ;;  %v243_v9 = vld [vmem:[#allocation7 + $0x60] sm:$0xff]  ;;  %v634_v14 = vpack.c.bf16 %v262_v13, %v261_v12  ;;  %v246_v16 = vld [vmem:[#allocation7 + $0x78] sm:$0xff]  ;;  %v151_v24 = vrot.slane %v146_v22, %v150_v21  ;;  %v155_v25 = vrot.slane %v146_v22, %v154_v23  ;;  %v343_v35 = vld [vmem:[#allocation8 + $0x10] sm:$0xff] }
  0x6b   :  { %575 = vmatprep.subr.bf16.mxu0 %v574_v6  ;;  %v144_v6 = vld [vmem:[#allocation5 + $0x1f0] sm:$0xff]  ;;  %v632_v11 = vpack.c.bf16 %v244_v10, %v243_v9  ;;  %v341_v29 = vld [vmem:[#allocation8] sm:$0xff]  ;;  %v344_v36 = vld [vmem:[#allocation8 + $0x18] sm:$0xff] }
  0x6c   :  { %629 = vmatpush3.bf16.msra.mxu1 %v628_v47  ;;  %v604_v7 = vpack.c.bf16 %v144_v6, %v142_v5  ;;  %v642_v37 = vpack.c.bf16 %v344_v36, %v343_v35  ;;  %v345_v38 = vld [vmem:[#allocation8 + $0x20] sm:$0xff]  ;;  %v347_v41 = vld [vmem:[#allocation8 + $0x30] sm:$0xff]  ;;  %v350_v45 = vld [vmem:[#allocation8 + $0x48] sm:$0xff] }
  0x6d   :  { %631 = vmatprep.subr.bf16.mxu1 %v630_v48  ;;  %v349_v44 = vld [vmem:[#allocation8 + $0x40] sm:$0xff]  ;;  %v351_v47 = vld [vmem:[#allocation8 + $0x50] sm:$0xff]  ;;  %v352_v48 = vld [vmem:[#allocation8 + $0x58] sm:$0xff] }
  0x6e   :  { %577 = vmatpush1.bf16.msra.mxu0 %v576_v15  ;;  %v245_v15 = vld [vmem:[#allocation7 + $0x70] sm:$0xff]  ;;  %v651_v46 = vpack.c.bf16 %v350_v45, %v349_v44  ;;  %v354_v51 = vld [vmem:[#allocation8 + $0x68] sm:$0xff]  ;;  %v356_v54 = vld [vmem:[#allocation8 + $0x78] sm:$0xff] }
  0x6f   :  { %579 = vmatprep.subr.bf16.mxu0 %v578_v18  ;;  %v636_v17 = vpack.c.bf16 %v246_v16, %v245_v15  ;;  %v800_v18 = vmov 0.0|0.0   ;;  %v355_v53 = vld [vmem:[#allocation8 + $0x70] sm:$0xff] }
  0x70   :  { %633 = vmatpush3.bf16.msra.mxu1 %v632_v11  ;;  %v453_v58 = vld [vmem:[%s917_s4] ss:$0 sm:$0xff] }
  0x71   :  { %635 = vmatprep.subr.bf16.mxu1 %v634_v14  ;;  %v454_v63 = vld [vmem:[%s919_s6] ss:$0 sm:$0xff] }
  0x72   :  { %581 = vmatpush1.bf16.msra.mxu0 %v580_v27 }
  0x73   :  { %583 = vmatprep.subr.bf16.mxu0 %v582_v30  ;;  %v342_v30 = vld [vmem:[#allocation8 + $0x8] sm:$0xff] }
  0x74   :  { %637 = vmatpush3.bf16.msra.mxu1 %v636_v17  ;;  %v639_v33 = vpack.c.bf16 %v342_v30, %v341_v29 }
  0x75   :  { %638 = vmatprep.subr.bf16.mxu1 %v800_v18 }
  0x76   :  { %585 = vmatpush1.bf16.msra.mxu0 %v584_v39  ;;  %v346_v39 = vld [vmem:[#allocation8 + $0x28] sm:$0xff] }
  0x77   :  { %587 = vmatprep.subr.bf16.mxu0 %v586_v42  ;;  %v645_v40 = vpack.c.bf16 %v346_v39, %v345_v38  ;;  %v348_v42 = vld [vmem:[#allocation8 + $0x38] sm:$0xff] }
  0x78   :  { %v648_v43 = vpack.c.bf16 %v348_v42, %v347_v41 }
  0x7a   :  { %589 = vmatpush1.bf16.msra.mxu0 %v588_v49  ;;  %v654_v49 = vpack.c.bf16 %v352_v48, %v351_v47 }
  0x7b   :  { %591 = vmatprep.subr.bf16.mxu0 %v590_v50  ;;  %v353_v50 = vld [vmem:[#allocation8 + $0x60] sm:$0xff] }
  0x7c   :  { %v657_v52 = vpack.c.bf16 %v354_v51, %v353_v50 }
  0x7e   :  { %593 = vmatpush1.bf16.msra.mxu0 %v592_v55  ;;  %v660_v55 = vpack.c.bf16 %v356_v54, %v355_v53 }
  0x7f   :  { %595 = vmatprep.subr.bf16.mxu0 %v594_v56  ;;  %v802_v56 = vmov 0.0  }
  0x82   :  { %597 = vmatpush1.bf16.msra.mxu0 %v596_v61 }
  0x83   :  { %599 = vmatprep.subr.bf16.mxu0 %v598_v62 }
  0x86   :  { %601 = vmatpush1.bf16.msra.mxu0 %v600_v3 }
  0x87   :  { %603 = vmatprep.subr.bf16.mxu0 %v602_v4 }
  0x8a   :  { %605 = vmatpush1.bf16.msra.mxu0 %v604_v7 }
  0x8d   :  { %223 = vmatmul.mubr.f32.vlgmr.msra.gmra.mrb[0].mxu0 %v80_v8 }
 0x160   :  { %v224_v26 = vpop.f32.mrb[0].mxu0 }
 0x161   :  { %v225_v27 = vadd.f32 %v224_v26, %v151_v24  ;;  %v226_v28 = vpop.f32.mrb[1].mxu0 }
 0x162   :  { %v227_v31 = vadd.f32 %v226_v28, %v155_v25 }
 0x163   :  { %v229_v34 = vmax.f32 %v225_v27, 0.0 }
 0x164   :  { %v230_v32 = vmax.f32 %v227_v31, 0.0 }
 0x166   :  { %334 = vmatprep.mubr.f32.mxu1 %v230_v32 }
 0x167   :  { %335 = vmatmul.mubr.f32.vlgmr.msra.gmra.mrb[0].mxu1 %v229_v34 }
 0x168   :  { %640 = vmatpush3.bf16.msra.mxu1 %v639_v33  ;;  %539 = vmatprep.mubr.msk.f32.mxu1 %vm801_vm0, %v802_v56 }
 0x169   :  { %641 = vmatprep.subr.bf16.mxu1 %v800_v18 }
 0x16c   :  { %643 = vmatpush3.bf16.msra.mxu1 %v642_v37 }
 0x16d   :  { %644 = vmatprep.subr.bf16.mxu1 %v800_v18 }
 0x170   :  { %646 = vmatpush3.bf16.msra.mxu1 %v645_v40 }
 0x171   :  { %647 = vmatprep.subr.bf16.mxu1 %v800_v18 }
 0x174   :  { %649 = vmatpush3.bf16.msra.mxu1 %v648_v43 }
 0x175   :  { %650 = vmatprep.subr.bf16.mxu1 %v800_v18 }
 0x178   :  { %652 = vmatpush3.bf16.msra.mxu1 %v651_v46 }
 0x179   :  { %653 = vmatprep.subr.bf16.mxu1 %v800_v18 }
 0x17c   :  { %655 = vmatpush3.bf16.msra.mxu1 %v654_v49 }
 0x17d   :  { %656 = vmatprep.subr.bf16.mxu1 %v800_v18 }
 0x180   :  { %658 = vmatpush3.bf16.msra.mxu1 %v657_v52 }
 0x181   :  { %659 = vmatprep.subr.bf16.mxu1 %v800_v18 }
 0x184   :  { %661 = vmatpush3.bf16.msra.mxu1 %v660_v55 }
 0x23a   :  { %v487_v57 = vpop.f32.mrb[0].mxu1 }
 0x23b   :  { %v488_v59 = vpop.f32.mrb[1].mxu1 }
 0x23c   :  { %v489_v60 = vadd.f32 %v488_v59, %v487_v57 }
 0x23e   :  { %v337_v61 = vadd.f32 %v489_v60, %v453_v58 }
 0x240   :  { %v340_v62 = vmax.f32 %v337_v61, 0.0 }
 0x242   :  { %540 = vmatmul.mubr.f32.vlgmr.msra.gmra.mrb[2].mxu1 %v340_v62 }
 0x315   :  { %v430_v0 = vpop.f32.mrb[2].mxu1 }
 0x316   :  { %v431_v1 = vadd.f32 %v454_v63, %v430_v0  ;;  %v541_v2 = vpop.f32.mrb[3].mxu1 }
 0x318   :  { %v434_v3 = vmax.f32 %v431_v1, 0.0 }
 0x31a   :  { %435 = vst [vmem:[#allocation10] sm:$0xff] %v434_v3 }
 0x31b   :  { %773 = shalt.err (!%p770_p8)
}
 0x31c   :  { %s774_s11 = scalar_lea.hbm %s920_s7, 128 }
 0x31d   :  { %p775_p9 = scmp.ne.s32.totalorder %s920_s7, %s774_s11  ;;  %p778_p10 = scmp.lt.u32.totalorder %s774_s11, %s920_s7 }
 0x31f   :  { %p780_p11 = pnand %p778_p10, %p775_p9 }
 0x321   :  { %783 = shalt.err (!%p780_p11)
}
 0x322   :  { %445 = dma.vmem_to_hbm [thread:$0]  %s443_s8, 128, %s920_s7, [#allocation4]  }
 0x323   :  { %790 = dma.done.wait [#allocation4], 128  }
 0x324   :  { %791 = vsyncadd [#allocation4], 4294967168 }
 0x325   :  { %449 = vsyncpa [#allocation3], 1 }
 0x326   :  { %450 = vsyncpa [#allocation6], 1 }
 0x327   :  { %451 = vsyncpa [#allocation9], 1 }
 0x328   :  { %452 = vsyncpa [#allocation4], 1 }

// kernel: tpu_custom_call.1
= control target key start
LH: loop header
LB: loop body
LE: loop exit
PB: predicated region body
PF: predicated region fallthrough
CT: control target
= control target key end

     0   :  { %12 = vsyncpa [#allocation3], 0  ;;  %s913_s0 = inlined_call_operand.hbm [shape: f32[8,256], index: 0, kind: input, shape index: {}]   ;;  %s914_s1 = inlined_call_operand.hbm [shape: f32[256,256], index: 1, kind: input, shape index: {}]   ;;  %s915_s2 = inlined_call_operand.vmem [shape: f32[1,256], index: 2, kind: input, shape index: {}]   ;;  %s916_s3 = inlined_call_operand.hbm [shape: f32[256,128], index: 3, kind: input, shape index: {}]   ;;  %s917_s4 = inlined_call_operand.vmem [shape: f32[1,128], index: 4, kind: input, shape index: {}]   ;;  %s918_s5 = inlined_call_operand.hbm [shape: f32[128,128], index: 5, kind: input, shape index: {}]   ;;  %s919_s6 = inlined_call_operand.vmem [shape: f32[1,128], index: 6, kind: input, shape index: {}]   ;;  %s920_s7 = inlined_call_operand.hbm [shape: f32[8,128], index: 7, kind: output, shape index: {}]  }
   0x1   :  { %13 = vsyncpa [#allocation6], 0 }
   0x2   :  { %14 = vsyncpa [#allocation9], 0 }
   0x3   :  { %15 = vsyncpa [#allocation4], 0  ;;  %s792_s24 = smov [#allocation5]   ;;  %s674_s28 = scalar_lea.hbm %s914_s1, 8192 }
   0x4   :  { %s31_s25 = sshll.u32 %s792_s24, 4  ;;  %p675_p0 = scmp.ne.s32.totalorder %s914_s1, %s674_s28  ;;  %s32_s25 = int_to_ptr.vmem [resolvable:$true] %s31_s25 }
   0x5   :  { %p678_p1 = scmp.lt.u32.totalorder %s674_s28, %s914_s1 }
   0x7   :  { %p680_p2 = pnand %p678_p1, %p675_p0 }
   0x9   :  { %683 = shalt.err (!%p680_p2)
}
   0xa   :  { %s684_s10 = scalar_lea.vmem %s32_s25, 8192  ;;  %p689_p4 = scmp.lt.s32.totalorder %s32_s25, %s32_s25 }
   0xb   :  { %p685_p3 = scmp.ne.s32.totalorder %s32_s25, %s684_s10  ;;  %p690_p5 = scmp.lt.s32.totalorder %s684_s10, %s684_s10 }
   0xd   :  { %p691_p6 = por %p690_p5, %p689_p4 }
   0xf   :  { %p692_p7 = pnand %p691_p6, %p685_p3 }
  0x11   :  { %695 = shalt.err (!%p692_p7)
}
  0x12   :  { %s793_s11 = smov 256   ;;  %s794_s12 = smov 16  }
  0x13   :  { %37 = dma.hbm_to_vmem [thread:$0]  %s914_s1, 8192, %s32_s25, [#allocation6], %s793_s11, %s793_s11, %s794_s12  }
  0x14   :  { %s795_s15 = smov [#allocation2]   ;;  %s796_s17 = smov [#allocation7]  }
  0x15   :  { %s22_s16 = sshll.u32 %s795_s15, 4  ;;  %s45_s18 = sshll.u32 %s796_s17, 4  ;;  %s23_s16 = int_to_ptr.vmem [resolvable:$true] %s22_s16  ;;  %s46_s18 = int_to_ptr.vmem [resolvable:$true] %s45_s18 }
  0x16   :  { %s696_s21 = scalar_lea.hbm %s913_s0, 256 }
  0x17   :  { %p697_p8 = scmp.ne.s32.totalorder %s913_s0, %s696_s21  ;;  %p700_p9 = scmp.lt.u32.totalorder %s696_s21, %s913_s0 }
  0x19   :  { %p702_p10 = pnand %p700_p9, %p697_p8 }
  0x1b   :  { %705 = shalt.err (!%p702_p10)
}
  0x1c   :  { %s706_s1 = scalar_lea.vmem %s23_s16, 256  ;;  %p711_p12 = scmp.lt.s32.totalorder %s23_s16, %s23_s16 }
  0x1d   :  { %p707_p11 = scmp.ne.s32.totalorder %s23_s16, %s706_s1  ;;  %p712_p13 = scmp.lt.s32.totalorder %s706_s1, %s706_s1 }
  0x1f   :  { %p713_p0 = por %p712_p13, %p711_p12 }
  0x21   :  { %p714_p1 = pnand %p713_p0, %p707_p11 }
  0x23   :  { %717 = shalt.err (!%p714_p1)
}
  0x24   :  { %25 = dma.hbm_to_vmem [thread:$0]  %s913_s0, 256, %s23_s16, [#allocation3]  }
  0x25   :  { %s718_s30 = scalar_lea.hbm %s916_s3, 4096 }
  0x26   :  { %p719_p2 = scmp.ne.s32.totalorder %s916_s3, %s718_s30  ;;  %p722_p3 = scmp.lt.u32.totalorder %s718_s30, %s916_s3 }
  0x28   :  { %p724_p4 = pnand %p722_p3, %p719_p2 }
  0x2a   :  { %727 = shalt.err (!%p724_p4)
}
  0x2b   :  { %s728_s12 = scalar_lea.vmem %s46_s18, 4096  ;;  %p733_p6 = scmp.lt.s32.totalorder %s46_s18, %s46_s18 }
  0x2c   :  { %p729_p5 = scmp.ne.s32.totalorder %s46_s18, %s728_s12  ;;  %p734_p7 = scmp.lt.s32.totalorder %s728_s12, %s728_s12 }
  0x2e   :  { %p735_p8 = por %p734_p7, %p733_p6 }
  0x30   :  { %p736_p9 = pnand %p735_p8, %p729_p5 }
  0x32   :  { %739 = shalt.err (!%p736_p9)
}
  0x33   :  { %s797_s0 = smov 128   ;;  %s798_s13 = smov 8  }
  0x34   :  { %51 = dma.hbm_to_vmem [thread:$0]  %s916_s3, 4096, %s46_s18, [#allocation6], %s797_s0, %s797_s0, %s798_s13  }
  0x35   :  { %s799_s16 = smov [#allocation8]   ;;  %s740_s21 = scalar_lea.hbm %s918_s5, 2048 }
  0x36   :  { %s59_s17 = sshll.u32 %s799_s16, 4  ;;  %p741_p10 = scmp.ne.s32.totalorder %s918_s5, %s740_s21  ;;  %s60_s17 = int_to_ptr.vmem [resolvable:$true] %s59_s17 }
  0x37   :  { %p744_p11 = scmp.lt.u32.totalorder %s740_s21, %s918_s5 }
  0x39   :  { %p746_p12 = pnand %p744_p11, %p741_p10 }
  0x3b   :  { %749 = shalt.err (!%p746_p12)
}
  0x3c   :  { %s750_s1 = scalar_lea.vmem %s60_s17, 2048  ;;  %p755_p0 = scmp.lt.s32.totalorder %s60_s17, %s60_s17 }
  0x3d   :  { %p751_p13 = scmp.ne.s32.totalorder %s60_s17, %s750_s1  ;;  %p756_p1 = scmp.lt.s32.totalorder %s750_s1, %s750_s1 }
  0x3f   :  { %p757_p2 = por %p756_p1, %p755_p0 }
  0x41   :  { %p758_p3 = pnand %p757_p2, %p751_p13 }
  0x43   :  { %761 = shalt.err (!%p758_p3)
}
  0x44   :  { %65 = dma.hbm_to_vmem [thread:$0]  %s918_s5, 2048, %s60_s17, [#allocation9], %s797_s0, %s797_s0, %s798_s13  }
  0x45   :  { %784 = dma.done.wait [#allocation3], 256  }
  0x46   :  { %785 = vsyncadd [#allocation3], 4294967040 }
  0x47   :  { %786 = dma.done.wait [#allocation6], 12288  }
  0x48   :  { %787 = vsyncadd [#allocation6], 4294955008 }
  0x49   :  { %788 = dma.done.wait [#allocation9], 2048  }
  0x4a   :  { %789 = vsyncadd [#allocation9], 4294965248  ;;  %v83_v0 = vld [vmem:[#allocation5 + $0x8] sm:$0xff]  ;;  %v85_v1 = vld [vmem:[#allocation5 + $0x18] sm:$0xff]  ;;  %vm801_vm0 = vmmov 0   ;;  %s803_s30 = smov [#allocation10]  }
  0x4b   :  { %v82_v2 = vld [vmem:[#allocation5] sm:$0xff]  ;;  %v542_v3 = vpack.c.bf16 %v85_v1, %v83_v0  ;;  %v84_v4 = vld [vmem:[#allocation5 + $0x10] sm:$0xff]  ;;  %v87_v5 = vld [vmem:[#allocation5 + $0x28] sm:$0xff]  ;;  %s442_s8 = sshll.u32 %s803_s30, 4  ;;  %s443_s8 = int_to_ptr.vmem [resolvable:$true] %s442_s8 }
  0x4c   :  { %v89_v6 = vld [vmem:[#allocation5 + $0x38] sm:$0xff]  ;;  %v544_v7 = vpack.c.bf16 %v84_v4, %v82_v2  ;;  %v86_v9 = vld [vmem:[#allocation5 + $0x20] sm:$0xff]  ;;  %v88_v10 = vld [vmem:[#allocation5 + $0x30] sm:$0xff]  ;;  %s762_s9 = scalar_lea.vmem %s443_s8, 128  ;;  %p767_p5 = scmp.lt.s32.totalorder %s443_s8, %s443_s8 }
  0x4d   :  { %v546_v8 = vpack.c.bf16 %v89_v6, %v87_v5  ;;  %v91_v11 = vld [vmem:[#allocation5 + $0x48] sm:$0xff]  ;;  %543 = vmatprep.subr.bf16.mxu0 %v542_v3  ;;  %v93_v12 = vld [vmem:[#allocation5 + $0x58] sm:$0xff]  ;;  %v548_v13 = vpack.c.bf16 %v88_v10, %v86_v9  ;;  %v90_v15 = vld [vmem:[#allocation5 + $0x40] sm:$0xff]  ;;  %p763_p4 = scmp.ne.s32.totalorder %s443_s8, %s762_s9  ;;  %p768_p6 = scmp.lt.s32.totalorder %s762_s9, %s762_s9 }
  0x4e   :  { %545 = vmatpush1.bf16.msra.mxu0 %v544_v7  ;;  %v550_v14 = vpack.c.bf16 %v93_v12, %v91_v11  ;;  %v92_v16 = vld [vmem:[#allocation5 + $0x50] sm:$0xff]  ;;  %v95_v17 = vld [vmem:[#allocation5 + $0x68] sm:$0xff]  ;;  %v97_v18 = vld [vmem:[#allocation5 + $0x78] sm:$0xff] }
  0x4f   :  { %547 = vmatprep.subr.bf16.mxu0 %v546_v8  ;;  %v552_v19 = vpack.c.bf16 %v92_v16, %v90_v15  ;;  %v554_v20 = vpack.c.bf16 %v97_v18, %v95_v17  ;;  %v94_v21 = vld [vmem:[#allocation5 + $0x60] sm:$0xff]  ;;  %v96_v22 = vld [vmem:[#allocation5 + $0x70] sm:$0xff]  ;;  %v99_v23 = vld [vmem:[#allocation5 + $0x88] sm:$0xff]  ;;  %p769_p7 = por %p768_p6, %p767_p5 }
  0x50   :  { %v101_v24 = vld [vmem:[#allocation5 + $0x98] sm:$0xff]  ;;  %v556_v25 = vpack.c.bf16 %v96_v22, %v94_v21  ;;  %v98_v27 = vld [vmem:[#allocation5 + $0x80] sm:$0xff]  ;;  %v100_v28 = vld [vmem:[#allocation5 + $0x90] sm:$0xff] }
  0x51   :  { %v558_v26 = vpack.c.bf16 %v101_v24, %v99_v23  ;;  %v103_v29 = vld [vmem:[#allocation5 + $0xa8] sm:$0xff]  ;;  %v105_v30 = vld [vmem:[#allocation5 + $0xb8] sm:$0xff]  ;;  %v560_v31 = vpack.c.bf16 %v100_v28, %v98_v27  ;;  %v102_v33 = vld [vmem:[#allocation5 + $0xa0] sm:$0xff]  ;;  %p770_p8 = pnand %p769_p7, %p763_p4 }
  0x52   :  { %549 = vmatpush1.bf16.msra.mxu0 %v548_v13  ;;  %v562_v32 = vpack.c.bf16 %v105_v30, %v103_v29  ;;  %v104_v34 = vld [vmem:[#allocation5 + $0xb0] sm:$0xff]  ;;  %v107_v35 = vld [vmem:[#allocation5 + $0xc8] sm:$0xff]  ;;  %v109_v36 = vld [vmem:[#allocation5 + $0xd8] sm:$0xff] }
  0x53   :  { %551 = vmatprep.subr.bf16.mxu0 %v550_v14  ;;  %v564_v37 = vpack.c.bf16 %v104_v34, %v102_v33  ;;  %v106_v38 = vld [vmem:[#allocation5 + $0xc0] sm:$0xff]  ;;  %v108_v39 = vld [vmem:[#allocation5 + $0xd0] sm:$0xff]  ;;  %v566_v40 = vpack.c.bf16 %v109_v36, %v107_v35  ;;  %v111_v41 = vld [vmem:[#allocation5 + $0xe8] sm:$0xff] }
  0x54   :  { %v113_v42 = vld [vmem:[#allocation5 + $0xf8] sm:$0xff]  ;;  %v247_v44 = vld [vmem:[#allocation7 + $0x80] sm:$0xff]  ;;  %v248_v45 = vld [vmem:[#allocation7 + $0x88] sm:$0xff]  ;;  %v568_v51 = vpack.c.bf16 %v108_v39, %v106_v38 }
  0x55   :  { %v81_v43 = vld [vmem:[#allocation2 + $0x8] sm:$0xff]  ;;  %v231_v46 = vld [vmem:[#allocation7] sm:$0xff]  ;;  %v606_v47 = vpack.c.bf16 %v248_v45, %v247_v44  ;;  %v232_v48 = vld [vmem:[#allocation7 + $0x8] sm:$0xff]  ;;  %v570_v57 = vpack.c.bf16 %v113_v42, %v111_v41 }
  0x56   :  { %553 = vmatpush1.bf16.msra.mxu0 %v552_v19  ;;  %222 = vmatprep.mubr.f32.mxu0 %v81_v43  ;;  %v249_v49 = vld [vmem:[#allocation7 + $0x90] sm:$0xff]  ;;  %v250_v50 = vld [vmem:[#allocation7 + $0x98] sm:$0xff]  ;;  %v608_v52 = vpack.c.bf16 %v232_v48, %v231_v46  ;;  %v251_v56 = vld [vmem:[#allocation7 + $0xa0] sm:$0xff] }
  0x57   :  { %555 = vmatprep.subr.bf16.mxu0 %v554_v20  ;;  %v610_v53 = vpack.c.bf16 %v250_v50, %v249_v49  ;;  %v233_v54 = vld [vmem:[#allocation7 + $0x10] sm:$0xff]  ;;  %v234_v55 = vld [vmem:[#allocation7 + $0x18] sm:$0xff]  ;;  %v110_v58 = vld [vmem:[#allocation5 + $0xe0] sm:$0xff]  ;;  %607 = vmatprep.subr.bf16.mxu1 %v606_v47 }
  0x58   :  { %v112_v59 = vld [vmem:[#allocation5 + $0xf0] sm:$0xff]  ;;  %v252_v60 = vld [vmem:[#allocation7 + $0xa8] sm:$0xff]  ;;  %v117_v62 = vld [vmem:[#allocation5 + $0x118] sm:$0xff]  ;;  %609 = vmatpush3.bf16.msra.mxu1 %v608_v52  ;;  %v612_v63 = vpack.c.bf16 %v234_v55, %v233_v54 }
  0x59   :  { %v115_v61 = vld [vmem:[#allocation5 + $0x108] sm:$0xff]  ;;  %611 = vmatprep.subr.bf16.mxu1 %v610_v53  ;;  %v614_v0 = vpack.c.bf16 %v252_v60, %v251_v56  ;;  %v235_v1 = vld [vmem:[#allocation7 + $0x20] sm:$0xff]  ;;  %v572_v3 = vpack.c.bf16 %v112_v59, %v110_v58  ;;  %v253_v4 = vld [vmem:[#allocation7 + $0xb0] sm:$0xff] }
  0x5a   :  { %557 = vmatpush1.bf16.msra.mxu0 %v556_v25  ;;  %v236_v2 = vld [vmem:[#allocation7 + $0x28] sm:$0xff]  ;;  %v254_v5 = vld [vmem:[#allocation7 + $0xb8] sm:$0xff]  ;;  %v574_v6 = vpack.c.bf16 %v117_v62, %v115_v61  ;;  %v114_v7 = vld [vmem:[#allocation5 + $0x100] sm:$0xff] }
  0x5b   :  { %559 = vmatprep.subr.bf16.mxu0 %v558_v26  ;;  %v116_v8 = vld [vmem:[#allocation5 + $0x110] sm:$0xff]  ;;  %v119_v9 = vld [vmem:[#allocation5 + $0x128] sm:$0xff]  ;;  %v121_v10 = vld [vmem:[#allocation5 + $0x138] sm:$0xff]  ;;  %v616_v11 = vpack.c.bf16 %v236_v2, %v235_v1  ;;  %v618_v12 = vpack.c.bf16 %v254_v5, %v253_v4 }
  0x5c   :  { %613 = vmatpush3.bf16.msra.mxu1 %v612_v63  ;;  %v237_v13 = vld [vmem:[#allocation7 + $0x30] sm:$0xff]  ;;  %v238_v14 = vld [vmem:[#allocation7 + $0x38] sm:$0xff]  ;;  %v576_v15 = vpack.c.bf16 %v116_v8, %v114_v7  ;;  %v255_v16 = vld [vmem:[#allocation7 + $0xc0] sm:$0xff]  ;;  %v578_v18 = vpack.c.bf16 %v121_v10, %v119_v9 }
  0x5d   :  { %615 = vmatprep.subr.bf16.mxu1 %v614_v0  ;;  %v256_v17 = vld [vmem:[#allocation7 + $0xc8] sm:$0xff]  ;;  %v118_v19 = vld [vmem:[#allocation5 + $0x120] sm:$0xff]  ;;  %v120_v20 = vld [vmem:[#allocation5 + $0x130] sm:$0xff]  ;;  %v620_v23 = vpack.c.bf16 %v238_v14, %v237_v13 }
  0x5e   :  { %561 = vmatpush1.bf16.msra.mxu0 %v560_v31  ;;  %v123_v21 = vld [vmem:[#allocation5 + $0x148] sm:$0xff]  ;;  %v125_v22 = vld [vmem:[#allocation5 + $0x158] sm:$0xff]  ;;  %v622_v24 = vpack.c.bf16 %v256_v17, %v255_v16  ;;  %v239_v25 = vld [vmem:[#allocation7 + $0x40] sm:$0xff]  ;;  %v580_v27 = vpack.c.bf16 %v120_v20, %v118_v19  ;;  %v148_v19 = vlaneseq }
  0x5f   :  { %563 = vmatprep.subr.bf16.mxu0 %v562_v32  ;;  %v240_v26 = vld [vmem:[#allocation7 + $0x48] sm:$0xff]  ;;  %v257_v28 = vld [vmem:[#allocation7 + $0xd0] sm:$0xff]  ;;  %v258_v29 = vld [vmem:[#allocation7 + $0xd8] sm:$0xff]  ;;  %v582_v30 = vpack.c.bf16 %v125_v22, %v123_v21 }
  0x60   :  { %617 = vmatpush3.bf16.msra.mxu1 %v616_v11  ;;  %v122_v31 = vld [vmem:[#allocation5 + $0x140] sm:$0xff]  ;;  %v124_v32 = vld [vmem:[#allocation5 + $0x150] sm:$0xff]  ;;  %v127_v33 = vld [vmem:[#allocation5 + $0x168] sm:$0xff]  ;;  %v624_v35 = vpack.c.bf16 %v240_v26, %v239_v25  ;;  %v626_v36 = vpack.c.bf16 %v258_v29, %v257_v28  ;;  %v149_v20 = vshrl.u32 %v148_v19, 7 }
  0x61   :  { %619 = vmatprep.subr.bf16.mxu1 %v618_v12  ;;  %v129_v34 = vld [vmem:[#allocation5 + $0x178] sm:$0xff]  ;;  %v584_v39 = vpack.c.bf16 %v124_v32, %v122_v31  ;;  %v260_v41 = vld [vmem:[#allocation7 + $0xe8] sm:$0xff]  ;;  %v126_v43 = vld [vmem:[#allocation5 + $0x160] sm:$0xff] }
  0x62   :  { %565 = vmatpush1.bf16.msra.mxu0 %v564_v37  ;;  %v241_v37 = vld [vmem:[#allocation7 + $0x50] sm:$0xff]  ;;  %v242_v38 = vld [vmem:[#allocation7 + $0x58] sm:$0xff]  ;;  %v586_v42 = vpack.c.bf16 %v129_v34, %v127_v33  ;;  %v131_v45 = vld [vmem:[#allocation5 + $0x188] sm:$0xff]  ;;  %v150_v21 = vsub.s32 0, %v149_v20 }
  0x63   :  { %567 = vmatprep.subr.bf16.mxu0 %v566_v40  ;;  %v259_v40 = vld [vmem:[#allocation7 + $0xe0] sm:$0xff]  ;;  %v128_v44 = vld [vmem:[#allocation5 + $0x170] sm:$0xff]  ;;  %v133_v46 = vld [vmem:[#allocation5 + $0x198] sm:$0xff]  ;;  %v628_v47 = vpack.c.bf16 %v242_v38, %v241_v37 }
  0x64   :  { %621 = vmatpush3.bf16.msra.mxu1 %v620_v23  ;;  %v630_v48 = vpack.c.bf16 %v260_v41, %v259_v40  ;;  %v588_v49 = vpack.c.bf16 %v128_v44, %v126_v43  ;;  %v590_v50 = vpack.c.bf16 %v133_v46, %v131_v45  ;;  %v132_v52 = vld [vmem:[#allocation5 + $0x190] sm:$0xff]  ;;  %v135_v53 = vld [vmem:[#allocation5 + $0x1a8] sm:$0xff]  ;;  %v137_v54 = vld [vmem:[#allocation5 + $0x1b8] sm:$0xff]  ;;  %v154_v23 = vsub.s32 1, %v149_v20 }
  0x65   :  { %623 = vmatprep.subr.bf16.mxu1 %v622_v24  ;;  %v594_v56 = vpack.c.bf16 %v137_v54, %v135_v53  ;;  %v136_v58 = vld [vmem:[#allocation5 + $0x1b0] sm:$0xff]  ;;  %v139_v59 = vld [vmem:[#allocation5 + $0x1c8] sm:$0xff]  ;;  %v141_v60 = vld [vmem:[#allocation5 + $0x1d8] sm:$0xff] }
  0x66   :  { %569 = vmatpush1.bf16.msra.mxu0 %v568_v51  ;;  %v130_v51 = vld [vmem:[#allocation5 + $0x180] sm:$0xff]  ;;  %v598_v62 = vpack.c.bf16 %v141_v60, %v139_v59  ;;  %v140_v0 = vld [vmem:[#allocation5 + $0x1d0] sm:$0xff]  ;;  %v143_v1 = vld [vmem:[#allocation5 + $0x1e8] sm:$0xff] }
  0x67   :  { %571 = vmatprep.subr.bf16.mxu0 %v570_v57  ;;  %v592_v55 = vpack.c.bf16 %v132_v52, %v130_v51  ;;  %v134_v57 = vld [vmem:[#allocation5 + $0x1a0] sm:$0xff]  ;;  %v145_v2 = vld [vmem:[#allocation5 + $0x1f8] sm:$0xff]  ;;  %v80_v8 = vld [vmem:[#allocation2] sm:$0xff] }
  0x68   :  { %625 = vmatpush3.bf16.msra.mxu1 %v624_v35  ;;  %v596_v61 = vpack.c.bf16 %v136_v58, %v134_v57  ;;  %v138_v63 = vld [vmem:[#allocation5 + $0x1c0] sm:$0xff]  ;;  %v602_v4 = vpack.c.bf16 %v145_v2, %v143_v1  ;;  %v244_v10 = vld [vmem:[#allocation7 + $0x68] sm:$0xff]  ;;  %v261_v12 = vld [vmem:[#allocation7 + $0xf0] sm:$0xff] }
  0x69   :  { %627 = vmatprep.subr.bf16.mxu1 %v626_v36  ;;  %v142_v5 = vld [vmem:[#allocation5 + $0x1e0] sm:$0xff]  ;;  %v262_v13 = vld [vmem:[#allocation7 + $0xf8] sm:$0xff]  ;;  %v146_v22 = vld [vmem:[%s915_s2] sm:$0x3] }
  0x6a   :  { %573 = vmatpush1.bf16.msra.mxu0 %v572_v3  ;;  %v600_v3 = vpack.c.bf16 %v140_v0, %v138_v63  ;;  %v243_v9 = vld [vmem:[#allocation7 + $0x60] sm:$0xff]  ;;  %v634_v14 = vpack.c.bf16 %v262_v13, %v261_v12  ;;  %v246_v16 = vld [vmem:[#allocation7 + $0x78] sm:$0xff]  ;;  %v151_v24 = vrot.slane %v146_v22, %v150_v21  ;;  %v155_v25 = vrot.slane %v146_v22, %v154_v23  ;;  %v343_v35 = vld [vmem:[#allocation8 + $0x10] sm:$0xff] }
  0x6b   :  { %575 = vmatprep.subr.bf16.mxu0 %v574_v6  ;;  %v144_v6 = vld [vmem:[#allocation5 + $0x1f0] sm:$0xff]  ;;  %v632_v11 = vpack.c.bf16 %v244_v10, %v243_v9  ;;  %v341_v29 = vld [vmem:[#allocation8] sm:$0xff]  ;;  %v344_v36 = vld [vmem:[#allocation8 + $0x18] sm:$0xff] }
  0x6c   :  { %629 = vmatpush3.bf16.msra.mxu1 %v628_v47  ;;  %v604_v7 = vpack.c.bf16 %v144_v6, %v142_v5  ;;  %v642_v37 = vpack.c.bf16 %v344_v36, %v343_v35  ;;  %v345_v38 = vld [vmem:[#allocation8 + $0x20] sm:$0xff]  ;;  %v347_v41 = vld [vmem:[#allocation8 + $0x30] sm:$0xff]  ;;  %v350_v45 = vld [vmem:[#allocation8 + $0x48] sm:$0xff] }
  0x6d   :  { %631 = vmatprep.subr.bf16.mxu1 %v630_v48  ;;  %v349_v44 = vld [vmem:[#allocation8 + $0x40] sm:$0xff]  ;;  %v351_v47 = vld [vmem:[#allocation8 + $0x50] sm:$0xff]  ;;  %v352_v48 = vld [vmem:[#allocation8 + $0x58] sm:$0xff] }
  0x6e   :  { %577 = vmatpush1.bf16.msra.mxu0 %v576_v15  ;;  %v245_v15 = vld [vmem:[#allocation7 + $0x70] sm:$0xff]  ;;  %v651_v46 = vpack.c.bf16 %v350_v45, %v349_v44  ;;  %v354_v51 = vld [vmem:[#allocation8 + $0x68] sm:$0xff]  ;;  %v356_v54 = vld [vmem:[#allocation8 + $0x78] sm:$0xff] }
  0x6f   :  { %579 = vmatprep.subr.bf16.mxu0 %v578_v18  ;;  %v636_v17 = vpack.c.bf16 %v246_v16, %v245_v15  ;;  %v800_v18 = vmov 0.0|0.0   ;;  %v355_v53 = vld [vmem:[#allocation8 + $0x70] sm:$0xff] }
  0x70   :  { %633 = vmatpush3.bf16.msra.mxu1 %v632_v11  ;;  %v453_v58 = vld [vmem:[%s917_s4] ss:$0 sm:$0xff] }
  0x71   :  { %635 = vmatprep.subr.bf16.mxu1 %v634_v14  ;;  %v454_v63 = vld [vmem:[%s919_s6] ss:$0 sm:$0xff] }
  0x72   :  { %581 = vmatpush1.bf16.msra.mxu0 %v580_v27 }
  0x73   :  { %583 = vmatprep.subr.bf16.mxu0 %v582_v30  ;;  %v342_v30 = vld [vmem:[#allocation8 + $0x8] sm:$0xff] }
  0x74   :  { %637 = vmatpush3.bf16.msra.mxu1 %v636_v17  ;;  %v639_v33 = vpack.c.bf16 %v342_v30, %v341_v29 }
  0x75   :  { %638 = vmatprep.subr.bf16.mxu1 %v800_v18 }
  0x76   :  { %585 = vmatpush1.bf16.msra.mxu0 %v584_v39  ;;  %v346_v39 = vld [vmem:[#allocation8 + $0x28] sm:$0xff] }
  0x77   :  { %587 = vmatprep.subr.bf16.mxu0 %v586_v42  ;;  %v645_v40 = vpack.c.bf16 %v346_v39, %v345_v38  ;;  %v348_v42 = vld [vmem:[#allocation8 + $0x38] sm:$0xff] }
  0x78   :  { %v648_v43 = vpack.c.bf16 %v348_v42, %v347_v41 }
  0x7a   :  { %589 = vmatpush1.bf16.msra.mxu0 %v588_v49  ;;  %v654_v49 = vpack.c.bf16 %v352_v48, %v351_v47 }
  0x7b   :  { %591 = vmatprep.subr.bf16.mxu0 %v590_v50  ;;  %v353_v50 = vld [vmem:[#allocation8 + $0x60] sm:$0xff] }
  0x7c   :  { %v657_v52 = vpack.c.bf16 %v354_v51, %v353_v50 }
  0x7e   :  { %593 = vmatpush1.bf16.msra.mxu0 %v592_v55  ;;  %v660_v55 = vpack.c.bf16 %v356_v54, %v355_v53 }
  0x7f   :  { %595 = vmatprep.subr.bf16.mxu0 %v594_v56  ;;  %v802_v56 = vmov 0.0  }
  0x82   :  { %597 = vmatpush1.bf16.msra.mxu0 %v596_v61 }
  0x83   :  { %599 = vmatprep.subr.bf16.mxu0 %v598_v62 }
  0x86   :  { %601 = vmatpush1.bf16.msra.mxu0 %v600_v3 }
  0x87   :  { %603 = vmatprep.subr.bf16.mxu0 %v602_v4 }
  0x8a   :  { %605 = vmatpush1.bf16.msra.mxu0 %v604_v7 }
  0x8d   :  { %223 = vmatmul.mubr.f32.vlgmr.msra.gmra.mrb[0].mxu0 %v80_v8 }
 0x160   :  { %v224_v26 = vpop.f32.mrb[0].mxu0 }
 0x161   :  { %v225_v27 = vadd.f32 %v224_v26, %v151_v24  ;;  %v226_v28 = vpop.f32.mrb[1].mxu0 }
 0x162   :  { %v227_v31 = vadd.f32 %v226_v28, %v155_v25 }
 0x163   :  { %v229_v34 = vmax.f32 %v225_v27, 0.0 }
 0x164   :  { %v230_v32 = vmax.f32 %v227_v31, 0.0 }
 0x166   :  { %334 = vmatprep.mubr.f32.mxu1 %v230_v32 }
 0x167   :  { %335 = vmatmul.mubr.f32.vlgmr.msra.gmra.mrb[0].mxu1 %v229_v34 }
 0x168   :  { %640 = vmatpush3.bf16.msra.mxu1 %v639_v33  ;;  %539 = vmatprep.mubr.msk.f32.mxu1 %vm801_vm0, %v802_v56 }
 0x169   :  { %641 = vmatprep.subr.bf16.mxu1 %v800_v18 }
 0x16c   :  { %643 = vmatpush3.bf16.msra.mxu1 %v642_v37 }
 0x16d   :  { %644 = vmatprep.subr.bf16.mxu1 %v800_v18 }
 0x170   :  { %646 = vmatpush3.bf16.msra.mxu1 %v645_v40 }
 0x171   :  { %647 = vmatprep.subr.bf16.mxu1 %v800_v18 }
 0x174   :  { %649 = vmatpush3.bf16.msra.mxu1 %v648_v43 }
 0x175   :  { %650 = vmatprep.subr.bf16.mxu1 %v800_v18 }
 0x178   :  { %652 = vmatpush3.bf16.msra.mxu1 %v651_v46 }
 0x179   :  { %653 = vmatprep.subr.bf16.mxu1 %v800_v18 }
 0x17c   :  { %655 = vmatpush3.bf16.msra.mxu1 %v654_v49 }
 0x17d   :  { %656 = vmatprep.subr.bf16.mxu1 %v800_v18 }
 0x180   :  { %658 = vmatpush3.bf16.msra.mxu1 %v657_v52 }
 0x181   :  { %659 = vmatprep.subr.bf16.mxu1 %v800_v18 }
 0x184   :  { %661 = vmatpush3.bf16.msra.mxu1 %v660_v55 }
 0x23a   :  { %v487_v57 = vpop.f32.mrb[0].mxu1 }
 0x23b   :  { %v488_v59 = vpop.f32.mrb[1].mxu1 }
 0x23c   :  { %v489_v60 = vadd.f32 %v488_v59, %v487_v57 }
 0x23e   :  { %v337_v61 = vadd.f32 %v489_v60, %v453_v58 }
 0x240   :  { %v340_v62 = vmax.f32 %v337_v61, 0.0 }
 0x242   :  { %540 = vmatmul.mubr.f32.vlgmr.msra.gmra.mrb[2].mxu1 %v340_v62 }
 0x315   :  { %v430_v0 = vpop.f32.mrb[2].mxu1 }
 0x316   :  { %v431_v1 = vadd.f32 %v454_v63, %v430_v0  ;;  %v541_v2 = vpop.f32.mrb[3].mxu1 }
 0x318   :  { %v434_v3 = vmax.f32 %v431_v1, 0.0 }
 0x31a   :  { %435 = vst [vmem:[#allocation10] sm:$0xff] %v434_v3 }
 0x31b   :  { %773 = shalt.err (!%p770_p8)
}
 0x31c   :  { %s774_s11 = scalar_lea.hbm %s920_s7, 128 }
 0x31d   :  { %p775_p9 = scmp.ne.s32.totalorder %s920_s7, %s774_s11  ;;  %p778_p10 = scmp.lt.u32.totalorder %s774_s11, %s920_s7 }
 0x31f   :  { %p780_p11 = pnand %p778_p10, %p775_p9 }
 0x321   :  { %783 = shalt.err (!%p780_p11)
}
 0x322   :  { %445 = dma.vmem_to_hbm [thread:$0]  %s443_s8, 128, %s920_s7, [#allocation4]  }
 0x323   :  { %790 = dma.done.wait [#allocation4], 128  }
 0x324   :  { %791 = vsyncadd [#allocation4], 4294967168 }
 0x325   :  { %449 = vsyncpa [#allocation3], 1 }
 0x326   :  { %450 = vsyncpa [#allocation6], 1 }
 0x327   :  { %451 = vsyncpa [#allocation9], 1 }
 0x328   :  { %452 = vsyncpa [#allocation4], 1 }

</bundles_post_ra>
